<compile_context>
chip_gen: v5e
topology: v5e:2x2
jax: 0.10.0
libtpu: 0.0.40
codegen_flags: <defaults>
</compile_context>

<pallas_src>
import functools

import jax
import jax.numpy as jnp
from jax import lax
from jax.experimental import pallas as pl
from jax.experimental.pallas import tpu as pltpu

_LANE = 128
_SUBLANE = 8
_TARGET_BLOCK_BYTES = 2 * 1024 * 1024   # per-input, per-pipeline-buffer DMA block


def _dice_partial_kernel(p_ref, t_ref, num_ref, den_ref, num_sc, den_sc, *,
                         power, bb, r, kt, dr, first_mask_g, needs_mask):
    """Accumulates per-sample, per-lane partial sums of p*t and p^pow + t^pow."""
    c = pl.program_id(1)          # feature-chunk index (parallel)
    k = pl.program_id(2)          # reduction step within the chunk (arbitrary)

    @pl.when(k == 0)
    def _():
        num_sc[...] = jnp.zeros_like(num_sc)
        den_sc[...] = jnp.zeros_like(den_sc)

    def accumulate(masked):
        p = p_ref[...].astype(jnp.float32)      # (bb, r, 128)
        t = t_ref[...].astype(jnp.float32)
        prod = p * t
        if power == 1:
            contrib = p + t
        elif power == 2:
            contrib = p * p + t * t
        else:
            contrib = p ** power + t ** power
        if masked:
            g = c * kt + k
            row = g * r + lax.broadcasted_iota(jnp.int32, (bb, r, _LANE), 1)
            keep = row < dr
            prod = jnp.where(keep, prod, 0.0)
            contrib = jnp.where(keep, contrib, 0.0)
        if r % _SUBLANE == 0:
            # Free reshape (inner factor == native sublane count), then a sum
            # over the vreg-group axis: pure elementwise VALU accumulation.
            num_sc[...] += prod.reshape(
                bb, r // _SUBLANE, _SUBLANE, _LANE).sum(axis=1)
            den_sc[...] += contrib.reshape(
                bb, r // _SUBLANE, _SUBLANE, _LANE).sum(axis=1)
        else:
            # Tiny-feature fallback (r == dr < 8): single-step sublane reduce.
            num_sc[...] += prod.sum(axis=1, keepdims=True)
            den_sc[...] += contrib.sum(axis=1, keepdims=True)

    if needs_mask:
        g = c * kt + k
        # Steady state stays mask-free; only blocks that cross (or lie beyond)
        # the end of the feature rows pay for the iota/compare/select.
        @pl.when(g < first_mask_g)
        def _():
            accumulate(False)

        @pl.when(g >= first_mask_g)
        def _():
            accumulate(True)
    else:
        accumulate(False)

    @pl.when(k == kt - 1)
    def _():
        # Collapse sublanes once per (batch tile, chunk); the remaining
        # 128-lane reduce + the dice formula are tiny wrapper glue.
        num_ref[0, 0] = jnp.sum(num_sc[...], axis=1)
        den_ref[0, 0] = jnp.sum(den_sc[...], axis=1)


def binary_dice_loss(predict, target, *, smooth=1e-05, p=1, reduction="mean",
                     block_rows=None, batch_block=None):
    assert predict.shape[0] == target.shape[0], \
        "predict & target batch size don't match"
    n = predict.shape[0]

    pred2d = predict.reshape(n, -1)
    targ2d = target.reshape(n, -1)
    d = pred2d.shape[1]

    # Lane alignment: only needed when D is not a multiple of 128.
    # TODO(synk): an in-kernel ragged-lane mask over a 2-D (N, D) layout would
    # remove this extra HBM round trip for unaligned D.
    d_pad = _LANE * pl.cdiv(d, _LANE)
    if d_pad != d:
        assert p > 0, "lane zero-padding is only valid for p > 0"
        pad = ((0, 0), (0, d_pad - d))
        pred2d = jnp.pad(pred2d, pad)
        targ2d = jnp.pad(targ2d, pad)
    dr = d_pad // _LANE                        # 128-wide feature rows / sample

    pred3 = pred2d.reshape(n, dr, _LANE)       # free reshape (contiguous)
    targ3 = targ2d.reshape(n, dr, _LANE)

    # --- Tile selection ----------------------------------------------------
    # Target ~2 MiB per input block per pipeline buffer (scaled by dtype), so
    # 2 inputs x 2 buffers + scratch + outputs stay ~10 MiB: under v5e's
    # 16 MiB default scoped VMEM and far under the explicit 32 MiB limit.
    itemsize = max(pred3.dtype.itemsize, targ3.dtype.itemsize)
    rows_target = max(_SUBLANE, _TARGET_BLOCK_BYTES // (_LANE * itemsize))

    r_cap = min(dr, rows_target if block_rows is None
                else max(1, int(block_rows)))
    r = (r_cap // _SUBLANE) * _SUBLANE
    if r == 0:
        r = dr                                 # dr < 8: single tiny row block
    acc_sub = _SUBLANE if r % _SUBLANE == 0 else 1

    if batch_block is None:
        bb = max(1, min(rows_target // r, n, 256))
    else:
        bb = max(1, min(int(batch_block), n))

    nb = pl.cdiv(n, bb)                        # batch tiles
    dr_blocks = pl.cdiv(dr, r)                 # row blocks per sample

    # Split the reduction over a second parallel axis when there is no batch
    # parallelism to hand to v7x's two TensorCores (harmless on v5e/v6e).
    if nb == 1 and dr_blocks >= 2:
        nc = 2
        kt = pl.cdiv(dr_blocks, nc)
    else:
        nc = 1
        kt = dr_blocks

    needs_mask = (nc * kt * r) > dr
    first_mask_g = dr // r

    kernel = functools.partial(
        _dice_partial_kernel, power=p, bb=bb, r=r, kt=kt, dr=dr,
        first_mask_g=first_mask_g, needs_mask=needs_mask)

    def in_map(i, c, k):
        # Clamp so a possible trailing fully-out-of-range logical block of the
        # last chunk re-reads the final valid block; it is fully masked.
        return (i, jnp.minimum(c * kt + k, dr_blocks - 1), 0)

    def out_map(i, c, k):
        return (i, c, 0, 0)

    if p in (1, 2):
        flops, transcendentals = 5 * n * d, 0
    else:
        flops, transcendentals = 4 * n * d, 2 * n * d

    num_out, den_out = pl.pallas_call(
        kernel,
        out_shape=(
            jax.ShapeDtypeStruct((nb, nc, bb, _LANE), jnp.float32),
            jax.ShapeDtypeStruct((nb, nc, bb, _LANE), jnp.float32),
        ),
        grid_spec=pltpu.PrefetchScalarGridSpec(
            num_scalar_prefetch=0,
            grid=(nb, nc, kt),
            in_specs=[
                pl.BlockSpec((bb, r, _LANE), in_map),
                pl.BlockSpec((bb, r, _LANE), in_map),
            ],
            out_specs=[
                pl.BlockSpec((1, 1, bb, _LANE), out_map),
                pl.BlockSpec((1, 1, bb, _LANE), out_map),
            ],
            scratch_shapes=[
                pltpu.VMEM((bb, acc_sub, _LANE), jnp.float32),
                pltpu.VMEM((bb, acc_sub, _LANE), jnp.float32),
            ],
        ),
        compiler_params=pltpu.CompilerParams(
            dimension_semantics=("parallel", "parallel", "arbitrary"),
            vmem_limit_bytes=32 * 1024 * 1024),
        cost_estimate=pl.CostEstimate(
            flops=int(flops),
            transcendentals=int(transcendentals),
            bytes_accessed=int(2 * n * d * itemsize
                               + 2 * nb * nc * bb * _LANE * 4)),
    )(pred3, targ3)

    # Tiny epilogue: combine chunk partials, reduce 128 lanes, dice formula.
    num = jnp.sum(num_out, axis=(1, 3)).reshape(-1)[:n]
    den = jnp.sum(den_out, axis=(1, 3)).reshape(-1)[:n]
    loss = 1.0 - 2.0 * num / (den + smooth)

    out_dtype = jnp.promote_types(predict.dtype, target.dtype)
    if reduction == "mean":
        return jnp.mean(loss).astype(out_dtype)
    elif reduction == "sum":
        return jnp.sum(loss).astype(out_dtype)
    elif reduction == "none":
        return loss.astype(out_dtype)
    else:
        raise Exception("Unexpected reduction {}".format(reduction))


def _reference(predict, target, smooth=1e-05, p=1, reduction="mean"):
    n = predict.shape[0]
    pr = predict.reshape(n, -1).astype(jnp.float32)
    tg = target.reshape(n, -1).astype(jnp.float32)
    num = jnp.sum(pr * tg, axis=1)
    den = jnp.sum(pr ** p + tg ** p, axis=1) + smooth
    loss = 1 - 2 * num / den
    if reduction == "mean":
        return loss.mean()
    if reduction == "sum":
        return loss.sum()
    return loss


if __name__ == "__main__":
    key = jax.random.PRNGKey(0)
    keys = jax.random.split(key, 8)

    # Case 1: canonical small NCHW input, p=1, mean reduction (bb=2 batching).
    x_shape = (2, 4, 16, 16)
    predict = jax.nn.sigmoid(jax.random.normal(keys[0], x_shape, dtype=jnp.float32))
    target = (jax.random.uniform(keys[1], x_shape) > 0.5).astype(jnp.float32)

    out = binary_dice_loss(predict, target, smooth=1e-05, p=1, reduction="mean")
    out = jax.block_until_ready(out)
    ref = _reference(predict, target, smooth=1e-05, p=1, reduction="mean")
    assert jnp.allclose(out, ref, atol=1e-5, rtol=1e-5), (out, ref)

    # Case 2: p=2, reduction='none'.
    out2 = binary_dice_loss(predict, target, smooth=1e-05, p=2, reduction="none")
    out2 = jax.block_until_ready(out2)
    ref2 = _reference(predict, target, smooth=1e-05, p=2, reduction="none")
    assert jnp.allclose(out2, ref2, atol=1e-5, rtol=1e-5), (out2, ref2)

    # Case 3: non-lane-aligned D (3*40*40 = 4800): pad path + masked tail
    # block + two-chunk split, reduction='sum'.
    y_shape = (2, 3, 40, 40)
    predict3 = jax.nn.sigmoid(jax.random.normal(keys[2], y_shape, dtype=jnp.float32))
    target3 = (jax.random.uniform(keys[3], y_shape) > 0.5).astype(jnp.float32)
    out3 = binary_dice_loss(predict3, target3, smooth=1e-05, p=1, reduction="sum")
    out3 = jax.block_until_ready(out3)
    ref3 = _reference(predict3, target3, smooth=1e-05, p=1, reduction="sum")
    assert jnp.allclose(out3, ref3, atol=1e-5, rtol=1e-5), (out3, ref3)

    # Case 4: N=1 with a forced small row block (r=48, dr=128): exercises the
    # two-chunk parallel reduction split, the unmasked/masked pl.when paths
    # and the clamped trailing block.
    z_shape = (1, 4, 64, 64)
    predict4 = jax.nn.sigmoid(jax.random.normal(keys[4], z_shape, dtype=jnp.float32))
    target4 = (jax.random.uniform(keys[5], z_shape) > 0.5).astype(jnp.float32)
    out4 = binary_dice_loss(predict4, target4, smooth=1e-05, p=1,
                            reduction="none", block_rows=48)
    out4 = jax.block_until_ready(out4)
    ref4 = _reference(predict4, target4, smooth=1e-05, p=1, reduction="none")
    assert jnp.allclose(out4, ref4, atol=1e-5, rtol=1e-5), (out4, ref4)

    # Case 5: ragged batch tiling (n=3 with 2 samples per block).
    w_shape = (3, 4, 16, 16)
    predict5 = jax.nn.sigmoid(jax.random.normal(keys[6], w_shape, dtype=jnp.float32))
    target5 = (jax.random.uniform(keys[7], w_shape) > 0.5).astype(jnp.float32)
    out5 = binary_dice_loss(predict5, target5, smooth=1e-05, p=1,
                            reduction="mean", batch_block=2)
    out5 = jax.block_until_ready(out5)
    ref5 = _reference(predict5, target5, smooth=1e-05, p=1, reduction="mean")
    assert jnp.allclose(out5, ref5, atol=1e-5, rtol=1e-5), (out5, ref5)

    # Case 6: bf16 inputs (dtype-scaled block sizing, bf16 output dtype).
    predict6 = predict.astype(jnp.bfloat16)
    target6 = target.astype(jnp.bfloat16)
    out6 = binary_dice_loss(predict6, target6, smooth=1e-05, p=1,
                            reduction="mean")
    out6 = jax.block_until_ready(out6)
    ref6 = _reference(predict6, target6, smooth=1e-05, p=1, reduction="mean")
    assert jnp.allclose(out6.astype(jnp.float32), ref6, atol=1e-2, rtol=1e-2), \
        (out6, ref6)

    # Case 7: D < 128 (single padded lane row, r == dr fallback path), p=2.
    v_shape = (2, 1, 10, 10)
    predict7 = jax.nn.sigmoid(jax.random.normal(keys[0], v_shape, dtype=jnp.float32))
    target7 = (jax.random.uniform(keys[1], v_shape) > 0.5).astype(jnp.float32)
    out7 = binary_dice_loss(predict7, target7, smooth=1e-05, p=2, reduction="mean")
    out7 = jax.block_until_ready(out7)
    ref7 = _reference(predict7, target7, smooth=1e-05, p=2, reduction="mean")
    assert jnp.allclose(out7, ref7, atol=1e-5, rtol=1e-5), (out7, ref7)

    print("KERNEL_OK")
</pallas_src>

<mosaic_0001>
module attributes {stable_mosaic.version = 11 : i64} {
  func.func @_dice_partial_kernel(%arg0: i32, %arg1: i32, %arg2: i32, %arg3: memref<2x8x128xf32, #tpu.memory_space<vmem>>, %arg4: memref<2x8x128xf32, #tpu.memory_space<vmem>>, %arg5: memref<1x1x2x128xf32, #tpu.memory_space<vmem>>, %arg6: memref<1x1x2x128xf32, #tpu.memory_space<vmem>>, %arg7: memref<2x8x128xf32, #tpu.memory_space<vmem>>, %arg8: memref<2x8x128xf32, #tpu.memory_space<vmem>>) attributes {dimension_semantics = [#tpu.dimension_semantics<parallel>, #tpu.dimension_semantics<parallel>, #tpu.dimension_semantics<arbitrary>], iteration_bounds = array<i64: 1, 1, 1>, scalar_prefetch = 0 : i64, scratch_operands = 2 : i64, tpu.core_type = #tpu.core_type<tc>, window_params = [{transform_indices = @transform_0, window_bounds = array<i64: 2, 8, 128>}, {transform_indices = @transform_1, window_bounds = array<i64: 2, 8, 128>}, {transform_indices = @transform_2, window_bounds = array<i64: 1, 1, 2, 128>}, {transform_indices = @transform_3, window_bounds = array<i64: 1, 1, 2, 128>}]} {
    %c0_i32 = arith.constant 0 : i32
    %0 = arith.cmpi eq, %arg2, %c0_i32 : i32
    %1 = arith.extui %0 : i1 to i32
    %c0_i32_0 = arith.constant 0 : i32
    %2 = arith.cmpi ne, %1, %c0_i32_0 : i32
    scf.if %2 {
      %cst_21 = arith.constant 0.000000e+00 : f32
      %20 = vector.broadcast %cst_21 : f32 to vector<2x8x128xf32>
      %c0_22 = arith.constant 0 : index
      %c0_23 = arith.constant 0 : index
      %c0_24 = arith.constant 0 : index
      %21 = vector.load %arg7[%c0_22, %c0_23, %c0_24] : memref<2x8x128xf32, #tpu.memory_space<vmem>>, vector<2x8x128xf32>
      tpu.vector_store %arg7[%c0_22, %c0_23, %c0_24], %20 {strides = array<i32>} : memref<2x8x128xf32, #tpu.memory_space<vmem>>, vector<2x8x128xf32>,
      %cst_25 = arith.constant 0.000000e+00 : f32
      %22 = vector.broadcast %cst_25 : f32 to vector<2x8x128xf32>
      %c0_26 = arith.constant 0 : index
      %c0_27 = arith.constant 0 : index
      %c0_28 = arith.constant 0 : index
      %23 = vector.load %arg8[%c0_26, %c0_27, %c0_28] : memref<2x8x128xf32, #tpu.memory_space<vmem>>, vector<2x8x128xf32>
      tpu.vector_store %arg8[%c0_26, %c0_27, %c0_28], %22 {strides = array<i32>} : memref<2x8x128xf32, #tpu.memory_space<vmem>>, vector<2x8x128xf32>,
    } else {
    }
    %c0 = arith.constant 0 : index
    %c0_1 = arith.constant 0 : index
    %c0_2 = arith.constant 0 : index
    %3 = vector.load %arg3[%c0, %c0_1, %c0_2] : memref<2x8x128xf32, #tpu.memory_space<vmem>>, vector<2x8x128xf32>
    %c0_3 = arith.constant 0 : index
    %c0_4 = arith.constant 0 : index
    %c0_5 = arith.constant 0 : index
    %4 = vector.load %arg4[%c0_3, %c0_4, %c0_5] : memref<2x8x128xf32, #tpu.memory_space<vmem>>, vector<2x8x128xf32>
    %5 = arith.mulf %3, %4 : vector<2x8x128xf32>
    %6 = arith.addf %3, %4 : vector<2x8x128xf32>
    %c0_6 = arith.constant 0 : index
    %c0_7 = arith.constant 0 : index
    %c0_8 = arith.constant 0 : index
    %7 = vector.load %arg7[%c0_6, %c0_7, %c0_8] : memref<2x8x128xf32, #tpu.memory_space<vmem>>, vector<2x8x128xf32>
    %8 = vector.shape_cast %5 : vector<2x8x128xf32> to vector<2x1x8x128xf32>
    %cst = arith.constant dense<0.000000e+00> : vector<2x8x128xf32>
    %9 = vector.multi_reduction <add>, %8, %cst [1] : vector<2x1x8x128xf32> to vector<2x8x128xf32>
    %10 = arith.addf %7, %9 : vector<2x8x128xf32>
    %c0_9 = arith.constant 0 : index
    %c0_10 = arith.constant 0 : index
    %c0_11 = arith.constant 0 : index
    %11 = vector.load %arg7[%c0_9, %c0_10, %c0_11] : memref<2x8x128xf32, #tpu.memory_space<vmem>>, vector<2x8x128xf32>
    tpu.vector_store %arg7[%c0_9, %c0_10, %c0_11], %10 {strides = array<i32>} : memref<2x8x128xf32, #tpu.memory_space<vmem>>, vector<2x8x128xf32>,
    %c0_12 = arith.constant 0 : index
    %c0_13 = arith.constant 0 : index
    %c0_14 = arith.constant 0 : index
    %12 = vector.load %arg8[%c0_12, %c0_13, %c0_14] : memref<2x8x128xf32, #tpu.memory_space<vmem>>, vector<2x8x128xf32>
    %13 = vector.shape_cast %6 : vector<2x8x128xf32> to vector<2x1x8x128xf32>
    %cst_15 = arith.constant dense<0.000000e+00> : vector<2x8x128xf32>
    %14 = vector.multi_reduction <add>, %13, %cst_15 [1] : vector<2x1x8x128xf32> to vector<2x8x128xf32>
    %15 = arith.addf %12, %14 : vector<2x8x128xf32>
    %c0_16 = arith.constant 0 : index
    %c0_17 = arith.constant 0 : index
    %c0_18 = arith.constant 0 : index
    %16 = vector.load %arg8[%c0_16, %c0_17, %c0_18] : memref<2x8x128xf32, #tpu.memory_space<vmem>>, vector<2x8x128xf32>
    tpu.vector_store %arg8[%c0_16, %c0_17, %c0_18], %15 {strides = array<i32>} : memref<2x8x128xf32, #tpu.memory_space<vmem>>, vector<2x8x128xf32>,
    %c0_i32_19 = arith.constant 0 : i32
    %17 = arith.cmpi eq, %arg2, %c0_i32_19 : i32
    %18 = arith.extui %17 : i1 to i32
    %c0_i32_20 = arith.constant 0 : i32
    %19 = arith.cmpi ne, %18, %c0_i32_20 : i32
    scf.if %19 {
      %c0_21 = arith.constant 0 : index
      %c0_22 = arith.constant 0 : index
      %c0_23 = arith.constant 0 : index
      %20 = vector.load %arg7[%c0_21, %c0_22, %c0_23] : memref<2x8x128xf32, #tpu.memory_space<vmem>>, vector<2x8x128xf32>
      %cst_24 = arith.constant dense<0.000000e+00> : vector<2x128xf32>
      %21 = vector.multi_reduction <add>, %20, %cst_24 [1] : vector<2x8x128xf32> to vector<2x128xf32>
      %c0_25 = arith.constant 0 : index
      %c0_26 = arith.constant 0 : index
      %c0_27 = arith.constant 0 : index
      %c0_28 = arith.constant 0 : index
      %22 = vector.load %arg5[%c0_25, %c0_26, %c0_27, %c0_28] : memref<1x1x2x128xf32, #tpu.memory_space<vmem>>, vector<1x1x2x128xf32>
      %23 = vector.shape_cast %22 : vector<1x1x2x128xf32> to vector<2x128xf32>
      %24 = vector.shape_cast %21 : vector<2x128xf32> to vector<1x1x2x128xf32>
      tpu.vector_store %arg5[%c0_25, %c0_26, %c0_27, %c0_28], %24 {strides = array<i32>} : memref<1x1x2x128xf32, #tpu.memory_space<vmem>>, vector<1x1x2x128xf32>,
      %c0_29 = arith.constant 0 : index
      %c0_30 = arith.constant 0 : index
      %c0_31 = arith.constant 0 : index
      %25 = vector.load %arg8[%c0_29, %c0_30, %c0_31] : memref<2x8x128xf32, #tpu.memory_space<vmem>>, vector<2x8x128xf32>
      %cst_32 = arith.constant dense<0.000000e+00> : vector<2x128xf32>
      %26 = vector.multi_reduction <add>, %25, %cst_32 [1] : vector<2x8x128xf32> to vector<2x128xf32>
      %c0_33 = arith.constant 0 : index
      %c0_34 = arith.constant 0 : index
      %c0_35 = arith.constant 0 : index
      %c0_36 = arith.constant 0 : index
      %27 = vector.load %arg6[%c0_33, %c0_34, %c0_35, %c0_36] : memref<1x1x2x128xf32, #tpu.memory_space<vmem>>, vector<1x1x2x128xf32>
      %28 = vector.shape_cast %27 : vector<1x1x2x128xf32> to vector<2x128xf32>
      %29 = vector.shape_cast %26 : vector<2x128xf32> to vector<1x1x2x128xf32>
      tpu.vector_store %arg6[%c0_33, %c0_34, %c0_35, %c0_36], %29 {strides = array<i32>} : memref<1x1x2x128xf32, #tpu.memory_space<vmem>>, vector<1x1x2x128xf32>,
    } else {
    }
    return
  }
  func.func @transform_0(%arg0: i32, %arg1: i32, %arg2: i32) -> (i32, i32, i32) {
    %c1_i32 = arith.constant 1 : i32
    %0 = arith.muli %arg1, %c1_i32 : i32
    %1 = arith.addi %0, %arg2 : i32
    %c0_i32 = arith.constant 0 : i32
    %2 = arith.minsi %1, %c0_i32 : i32
    %c0_i32_0 = arith.constant 0 : i32
    %c0_i32_1 = arith.constant 0 : i32
    return %arg0, %2, %c0_i32_0 : i32, i32, i32
  }
  func.func @transform_1(%arg0: i32, %arg1: i32, %arg2: i32) -> (i32, i32, i32) {
    %c1_i32 = arith.constant 1 : i32
    %0 = arith.muli %arg1, %c1_i32 : i32
    %1 = arith.addi %0, %arg2 : i32
    %c0_i32 = arith.constant 0 : i32
    %2 = arith.minsi %1, %c0_i32 : i32
    %c0_i32_0 = arith.constant 0 : i32
    %c0_i32_1 = arith.constant 0 : i32
    return %arg0, %2, %c0_i32_0 : i32, i32, i32
  }
  func.func @transform_2(%arg0: i32, %arg1: i32, %arg2: i32) -> (i32, i32, i32, i32) {
    %c0_i32 = arith.constant 0 : i32
    %c0_i32_0 = arith.constant 0 : i32
    %c0_i32_1 = arith.constant 0 : i32
    return %arg0, %arg1, %c0_i32, %c0_i32_0 : i32, i32, i32, i32
  }
  func.func @transform_3(%arg0: i32, %arg1: i32, %arg2: i32) -> (i32, i32, i32, i32) {
    %c0_i32 = arith.constant 0 : i32
    %c0_i32_0 = arith.constant 0 : i32
    %c0_i32_1 = arith.constant 0 : i32
    return %arg0, %arg1, %c0_i32, %c0_i32_0 : i32, i32, i32, i32
  }
}

</mosaic_0001>

<bundles_post_ra>
// kernel: tpu_custom_call.1
= control target key start
LH: loop header
LB: loop body
LE: loop exit
PB: predicated region body
PF: predicated region fallthrough
CT: control target
= control target key end

     0   :  { %9 = vsyncpa [#allocation5], 0  ;;  %s323_s0 = inlined_call_operand.hbm [shape: f32[2,8,128], index: 0, kind: input, shape index: {}]   ;;  %s324_s1 = inlined_call_operand.hbm [shape: f32[2,8,128], index: 1, kind: input, shape index: {}]   ;;  %s325_s2 = inlined_call_operand.hbm [shape: f32[1,1,2,128], index: 2, kind: output, shape index: {0}]   ;;  %s326_s3 = inlined_call_operand.hbm [shape: f32[1,1,2,128], index: 3, kind: output, shape index: {1}]  }
   0x1   :  { %10 = vsyncpa [#allocation8], 0 }
   0x2   :  { %11 = vsyncpa [#allocation6], 0 }
   0x3   :  { %12 = vsyncpa [#allocation11], 0  ;;  %s22_s14 = sshll.u32 %s323_s0, 4  ;;  %s285_s15 = smov [#allocation4]   ;;  %s23_s14 = int_to_ptr.hbm [resolvable:$true] %s22_s14 }
   0x4   :  { %s24_s16 = sshll.u32 %s285_s15, 4  ;;  %s40_s19 = sshll.u32 %s324_s1, 4  ;;  %s25_s16 = int_to_ptr.vmem [resolvable:$true] %s24_s16  ;;  %s41_s19 = int_to_ptr.hbm [resolvable:$true] %s40_s19 }
   0x5   :  { %s286_s20 = smov 128   ;;  %s287_s21 = smov 8  }
   0x6   :  { %30 = dma.hbm_to_vmem [thread:$0]  %s23_s14, 256, %s25_s16, [#allocation5], %s286_s20, %s286_s20, %s287_s21  }
   0x7   :  { %s288_s22 = smov [#allocation7]  }
   0x8   :  { %s42_s23 = sshll.u32 %s288_s22, 4  ;;  %s43_s23 = int_to_ptr.vmem [resolvable:$true] %s42_s23 }
   0x9   :  { %48 = dma.hbm_to_vmem [thread:$0]  %s41_s19, 256, %s43_s23, [#allocation8], %s286_s20, %s286_s20, %s287_s21  }
   0xa   :  { %277 = dma.done.wait [#allocation5], 256  }
   0xb   :  { %278 = vsyncadd [#allocation5], 4294967040 }
   0xc   :  { %279 = dma.done.wait [#allocation8], 256  }
   0xd   :  { %280 = vsyncadd [#allocation8], 4294967040  ;;  %v71_v0 = vld [vmem:[#allocation4] sm:$0xff]  ;;  %v72_v1 = vld [vmem:[#allocation4 + $0x8] sm:$0xff]  ;;  %s289_s0 = smov [#allocation9]   ;;  %s144_s26 = sshll.u32 %s325_s2, 4  ;;  %s145_s26 = int_to_ptr.hbm [resolvable:$true] %s144_s26 }
   0xe   :  { %v73_v2 = vld [vmem:[#allocation7] sm:$0xff]  ;;  %v74_v3 = vld [vmem:[#allocation7 + $0x8] sm:$0xff]  ;;  %s142_s1 = sshll.u32 %s289_s0, 4  ;;  %vm114_vm0 = vcmask 1041409   ;;  %s290_s27 = smov [#allocation10]   ;;  %s143_s1 = int_to_ptr.vmem [resolvable:$true] %s142_s1 }
   0xf   :  { %v75_v4 = vmul.f32 %v73_v2, %v71_v0  ;;  %v77_v5 = vadd.f32 %v73_v2, %v71_v0  ;;  %v76_v6 = vmul.f32 %v74_v3, %v72_v1  ;;  %v78_v7 = vadd.f32 %v74_v3, %v72_v1  ;;  %s153_s28 = sshll.u32 %s290_s27, 4  ;;  %s155_s4 = sshll.u32 %s326_s3, 4  ;;  %s154_s28 = int_to_ptr.vmem [resolvable:$true] %s153_s28  ;;  %s156_s4 = int_to_ptr.hbm [resolvable:$true] %s155_s4 }
  0x11   :  { %v100_v8 = vrot.slane %v75_v4, 4  ;;  %v120_v9 = vrot.slane %v77_v5, 4  ;;  %v106_v10 = vrot.slane %v76_v6, 4  ;;  %v126_v11 = vrot.slane %v78_v7, 4 }
  0x13   :  { %v101_v12 = vadd.f32 %v100_v8, %v75_v4  ;;  %v121_v13 = vadd.f32 %v120_v9, %v77_v5  ;;  %v107_v14 = vadd.f32 %v106_v10, %v76_v6  ;;  %v127_v15 = vadd.f32 %v126_v11, %v78_v7 }
  0x15   :  { %v102_v16 = vrot.slane %v101_v12, 2  ;;  %v122_v17 = vrot.slane %v121_v13, 2  ;;  %v108_v18 = vrot.slane %v107_v14, 2  ;;  %v128_v19 = vrot.slane %v127_v15, 2 }
  0x17   :  { %v103_v20 = vadd.f32 %v102_v16, %v101_v12  ;;  %v123_v21 = vadd.f32 %v122_v17, %v121_v13  ;;  %v109_v22 = vadd.f32 %v108_v18, %v107_v14  ;;  %v129_v23 = vadd.f32 %v128_v19, %v127_v15 }
  0x19   :  { %v104_v24 = vrot.slane %v103_v20, 1  ;;  %v124_v25 = vrot.slane %v123_v21, 1  ;;  %v110_v26 = vrot.slane %v109_v22, 1  ;;  %v130_v27 = vrot.slane %v129_v23, 1 }
  0x1b   :  { %v105_v28 = vadd.f32 %v104_v24, %v103_v20  ;;  %v125_v29 = vadd.f32 %v124_v25, %v123_v21  ;;  %v111_v30 = vadd.f32 %v110_v26, %v109_v22  ;;  %v131_v31 = vadd.f32 %v130_v27, %v129_v23 }
  0x1d   :  { %v115_v32 = vsel %vm114_vm0, %v111_v30, %v105_v28  ;;  %v134_v33 = vsel %vm114_vm0, %v131_v31, %v125_v29 }
  0x1e   :  { %117 = vst [vmem:[#allocation9] sm:$0x3] %v115_v32 }
  0x1f   :  { %136 = vst [vmem:[#allocation10] sm:$0x3] %v134_v33  ;;  %147 = dma.vmem_to_hbm [thread:$0]  %s143_s1, 32, %s145_s26, [#allocation6]  }
  0x20   :  { %158 = dma.vmem_to_hbm [thread:$0]  %s154_s28, 32, %s156_s4, [#allocation11]  }
  0x21   :  { %281 = dma.done.wait [#allocation6], 32  }
  0x22   :  { %282 = vsyncadd [#allocation6], 4294967264 }
  0x23   :  { %283 = dma.done.wait [#allocation11], 32  }
  0x24   :  { %284 = vsyncadd [#allocation11], 4294967264 }
  0x25   :  { %167 = vsyncpa [#allocation5], 1 }
  0x26   :  { %168 = vsyncpa [#allocation8], 1 }
  0x27   :  { %169 = vsyncpa [#allocation6], 1 }
  0x28   :  { %170 = vsyncpa [#allocation11], 1 }

</bundles_post_ra>
